<compile_context>
chip_gen: v6e
topology: v6e:2x2x1
jax: 0.10.0
libtpu: 0.0.40
codegen_flags: <defaults>
</compile_context>

<pallas_src>
from functools import partial

import jax
import jax.numpy as jnp
from jax.experimental import pallas as pl
from jax.experimental.pallas import tpu as pltpu


def value_head_kernel(x_ref, cw_ref, w1_ref, b1_ref, w2_ref, scal_ref, out_ref,
                      *, fold, ck):
    """One batch tile of the fused value head.

    x_ref   : (TB, CP, L)       f32/bf16 VMEM  activations (NCHW view, lane-packed)
    cw_ref  : (CP, L) or (CP,1) f32      VMEM  BN-folded conv weight
    w1_ref  : (HW, 256)         f32      VMEM  fc1 weight (transposed vs. torch)
    b1_ref  : (1, 256)          f32      VMEM  fc1 bias
    w2_ref  : (1, 256)          f32      VMEM  fc2 weight (torch layout)
    scal_ref: (2,)              f32      SMEM  [BN-folded conv bias, fc2 bias]
    out_ref : (TB, 1)           f32      VMEM
    """
    tb, cp, L = x_ref.shape
    hw = L // fold
    n_chunks = cp // ck

    # Channel-chunked VPU FMAs into a 3-D accumulator.  Static Python loop ==
    # full unroll (trip count <= 4), so loads/FMAs interleave freely and stay
    # hidden under the x DMA.  Single cross-sublane reduce after the loop.
    acc3 = jnp.zeros((tb, ck, L), jnp.float32)
    for ci in range(n_chunks):
        c0 = ci * ck
        xs = x_ref[:, pl.ds(c0, ck), :].astype(jnp.float32)     # (TB, ck, L)
        ws = cw_ref[pl.ds(c0, ck), :]                           # (ck, L) or (ck, 1)
        acc3 = acc3 + xs * ws[None, :, :]
    part = jnp.sum(acc3, axis=1)                                # (TB, L) f32

    # Undo the lane packing: conv[b, p] = sum_f part[b, f*HW + p].
    conv = part[:, :hw]
    for f in range(1, fold):
        conv = conv + part[:, f * hw:(f + 1) * hw]              # (TB, HW)

    # BN-folded conv bias, then ReLU (f32 epilogue).
    act = jnp.maximum(conv + scal_ref[0], 0.0)                  # (TB, HW)

    # fc1 + ReLU on the MXU (f32 accumulation).
    h = jnp.dot(act, w1_ref[...], preferred_element_type=jnp.float32) + b1_ref[...]
    h = jnp.maximum(h, 0.0)                                     # (TB, 256)

    # fc2 (output width 1): VPU multiply + lane reduction instead of an MXU matmul.
    v = jnp.sum(h * w2_ref[...], axis=-1, keepdims=True) + scal_ref[1]
    out_ref[...] = jnp.tanh(v).astype(out_ref.dtype)            # (TB, 1)


def _device_kind():
    try:
        return jax.devices()[0].device_kind.lower()
    except Exception:
        return ""


def value_head(x_nchw, params, *, tb=None, vmem_limit_bytes=None, cast_x_to=None):
    """NCHW input -> (B, 1) value.

    tb / vmem_limit_bytes default per TPU generation (bigger tiles on the
    128 MiB-VMEM parts, smaller + >=2 grid steps on the 64 MiB / 2-TC parts).
    cast_x_to: optionally cast activations (e.g. jnp.bfloat16) before the kernel;
    only a net win when the input is already bf16 or the cast fuses upstream.
    """
    B, C, H, W = x_nchw.shape
    HW = H * W
    hidden = params["fc1_w"].shape[1]
    f32 = jnp.float32

    # ---- layout: lane-dense packing of the NCHW view --------------------------
    # (B, C, HW) with HW < 128 wastes half of every vreg and pads the VMEM tile
    # to 128 lanes.  Fold consecutive channels into the lane dim (free reshape)
    # so L = fold*HW = 128 and every lane is live.
    fold = 1
    if HW < 128 and 128 % HW == 0 and C % (128 // HW) == 0:
        fold = 128 // HW
    CP, L = C // fold, fold * HW

    x = x_nchw.reshape(B, CP, L)                   # free reshape, NO transpose
    if cast_x_to is not None and x.dtype != cast_x_to:
        x = x.astype(cast_x_to)

    # ---- fold eval-mode BatchNorm2d(1) into the 1x1 conv (tiny f32 arrays) ----
    scale = params["bn_gamma"].astype(f32) * jax.lax.rsqrt(
        params["bn_var"].astype(f32) + 1e-5)
    cw = params["conv_w"].reshape(C).astype(f32) * scale                  # (C,)
    if fold > 1:
        # Interleaved to match packed x: cw_p[c', f*HW + p] = cw[fold*c' + f].
        cw_p = jnp.broadcast_to(cw.reshape(CP, fold, 1),
                                (CP, fold, HW)).reshape(CP, L)
    else:
        cw_p = cw.reshape(CP, 1)                   # lane-broadcast in-kernel
    conv_bias = (params["conv_b"].astype(f32) - params["bn_mean"].astype(f32)) * scale \
                + params["bn_beta"].astype(f32)
    scalars = jnp.stack([conv_bias, params["fc2_b"].astype(f32)])         # (2,) SMEM

    w1 = params["fc1_w"].astype(f32)                                      # (HW, hidden)
    b1 = params["fc1_b"].astype(f32).reshape(1, hidden)
    w2 = params["fc2_w"].astype(f32).reshape(1, hidden)

    # ---- per-generation tile / VMEM defaults -----------------------------------
    kind = _device_kind()
    big_vmem = ("v5" in kind) or ("v6" in kind)     # 128 MiB VMEM, single TC
    if tb is None:
        tb = 256 if big_vmem else 128               # v7x/unknown: 64 MiB VMEM, 2 TCs
    if vmem_limit_bytes is None:
        vmem_limit_bytes = (96 if big_vmem else 48) * 1024 * 1024

    # Output block second-minor dim must be a multiple of 8 unless it covers B.
    if tb >= B:
        tb = B
        if (not big_vmem) and B >= 16:
            # Keep >= 2 grid steps so the "parallel" batch axis feeds both TCs.
            tb = max(8, (pl.cdiv(B, 2) // 8) * 8)
    else:
        tb = max(8, (tb // 8) * 8)
    grid = (pl.cdiv(B, tb),)

    # Channel chunk: bounds in-kernel f32 temporaries (xs / acc3) per chunk.
    ck = next((c for c in (64, 32, 16, 8) if CP % c == 0), CP)

    kernel = partial(value_head_kernel, fold=fold, ck=ck)

    return pl.pallas_call(
        kernel,
        out_shape=jax.ShapeDtypeStruct((B, 1), jnp.float32),
        grid_spec=pltpu.PrefetchScalarGridSpec(
            num_scalar_prefetch=0,
            grid=grid,
            in_specs=[
                pl.BlockSpec((tb, CP, L), lambda i: (i, 0, 0)),      # x: tiled over batch
                pl.BlockSpec(cw_p.shape, lambda i: (0, 0)),          # folded conv weight
                pl.BlockSpec((HW, hidden), lambda i: (0, 0)),        # fc1 weight (resident)
                pl.BlockSpec((1, hidden), lambda i: (0, 0)),         # fc1 bias
                pl.BlockSpec((1, hidden), lambda i: (0, 0)),         # fc2 weight
                pl.BlockSpec(memory_space=pltpu.MemorySpace.SMEM),   # scalar biases
            ],
            out_specs=pl.BlockSpec((tb, 1), lambda i: (i, 0)),
        ),
        compiler_params=pltpu.CompilerParams(
            dimension_semantics=("parallel",),     # multi-TC parts: shard batch tiles
            vmem_limit_bytes=vmem_limit_bytes,
        ),
    )(x, cw_p, w1, b1, w2, scalars)


def value_head_ref(x_nchw, params):
    """Pure-JAX reference matching the PyTorch module in eval mode."""
    B, C, H, W = x_nchw.shape
    HW = H * W
    x = x_nchw.reshape(B, C, HW).astype(jnp.float32)
    conv = jnp.einsum("bcp,c->bp", x, params["conv_w"].reshape(C)) + params["conv_b"]
    scale = params["bn_gamma"] * jax.lax.rsqrt(params["bn_var"] + 1e-5)
    act = jnp.maximum((conv - params["bn_mean"]) * scale + params["bn_beta"], 0.0)
    h = jnp.maximum(act @ params["fc1_w"] + params["fc1_b"], 0.0)
    v = h @ params["fc2_w"].reshape(-1, 1) + params["fc2_b"]
    return jnp.tanh(v)


def init_params(key, state_shape, channels=256, hidden=256):
    """Deterministic synthetic parameters matching the torch module's shapes."""
    H, W = state_shape
    HW = H * W
    f32 = jnp.float32
    k_cw, k_w1, k_b1, k_w2 = jax.random.split(key, 4)
    return {
        # Conv2d(256, 1, 1): torch weight (1, C, 1, 1) -> stored as (C, 1)
        "conv_w": jax.random.normal(k_cw, (channels, 1), f32) * 0.05,
        "conv_b": jnp.asarray(0.01, f32),
        # BatchNorm2d(1) eval-mode params / running stats.
        "bn_gamma": jnp.asarray(1.2, f32),
        "bn_beta": jnp.asarray(0.1, f32),
        "bn_mean": jnp.asarray(0.05, f32),
        "bn_var": jnp.asarray(0.9, f32),
        # Linear(HW, 256): torch weight (256, HW) -> stored transposed (HW, 256)
        "fc1_w": jax.random.normal(k_w1, (HW, hidden), f32) * 0.05,
        "fc1_b": jax.random.normal(k_b1, (1, hidden), f32) * 0.01,
        # Linear(256, 1): torch weight layout (1, 256)
        "fc2_w": jax.random.normal(k_w2, (1, hidden), f32) * 0.05,
        "fc2_b": jnp.asarray(0.0, f32),
    }


if __name__ == "__main__":
    key = jax.random.PRNGKey(0)
    k_x, k_p = jax.random.split(key)

    state_shape = (8, 8)            # reduce(*) -> HW = 64 (fc1 input width)
    B, C = 16, 256                  # conv1 input channels fixed at 256 by the module
    H, W = state_shape

    x = jax.random.normal(k_x, (B, C, H, W), jnp.float32)   # NCHW, like PyTorch
    params = init_params(k_p, state_shape)

    ref = value_head_ref(x, params)

    # f32 path; small tb so the batch grid (grid=(2,)) and pipelining are exercised.
    out = jax.block_until_ready(value_head(x, params, tb=8))
    assert out.shape == (B, 1) and out.dtype == jnp.float32
    assert bool(jnp.allclose(out, ref, atol=1e-4, rtol=1e-4))

    # Auto per-generation tiling path (device-kind driven defaults).
    out_auto = jax.block_until_ready(value_head(x, params))
    assert bool(jnp.allclose(out_auto, ref, atol=1e-4, rtol=1e-4))

    # bf16 activation path (halves HBM bytes when the producer already emits bf16).
    out_bf16 = jax.block_until_ready(
        value_head(x, params, tb=8, cast_x_to=jnp.bfloat16))
    assert bool(jnp.allclose(out_bf16, ref, atol=5e-2, rtol=5e-2))

    print("KERNEL_OK")
</pallas_src>

<mosaic_0001>
module attributes {stable_mosaic.version = 11 : i64} {
  func.func @value_head_kernel(%arg0: i32, %arg1: memref<8x128x128xf32, #tpu.memory_space<vmem>>, %arg2: memref<128x128xf32, #tpu.memory_space<vmem>>, %arg3: memref<64x256xf32, #tpu.memory_space<vmem>>, %arg4: memref<1x256xf32, #tpu.memory_space<vmem>>, %arg5: memref<1x256xf32, #tpu.memory_space<vmem>>, %arg6: memref<2xf32, #tpu.memory_space<smem>>, %arg7: memref<8x1xf32, #tpu.memory_space<vmem>>) attributes {dimension_semantics = [#tpu.dimension_semantics<parallel>], iteration_bounds = array<i64: 2>, scalar_prefetch = 0 : i64, scratch_operands = 0 : i64, tpu.core_type = #tpu.core_type<tc>, window_params = [{transform_indices = @transform_0, window_bounds = array<i64: 8, 128, 128>}, {pipeline_mode = #tpu.pipeline_mode<synchronous>, transform_indices = @transform_1, window_bounds = array<i64: 128, 128>}, {pipeline_mode = #tpu.pipeline_mode<synchronous>, transform_indices = @transform_2, window_bounds = array<i64: 64, 256>}, {pipeline_mode = #tpu.pipeline_mode<synchronous>, transform_indices = @transform_3, window_bounds = array<i64: 1, 256>}, {pipeline_mode = #tpu.pipeline_mode<synchronous>, transform_indices = @transform_4, window_bounds = array<i64: 1, 256>}, {transform_indices = @transform_5, window_bounds = array<i64: 2>}, {transform_indices = @transform_6, window_bounds = array<i64: 8, 1>}]} {
    %cst = arith.constant 0.000000e+00 : f32
    %0 = vector.broadcast %cst : f32 to vector<8x64x128xf32>
    %c0 = arith.constant 0 : index
    %c0_0 = arith.constant 0 : index
    %c0_1 = arith.constant 0 : index
    %1 = vector.load %arg1[%c0, %c0_0, %c0_1] : memref<8x128x128xf32, #tpu.memory_space<vmem>>, vector<8x64x128xf32>
    %c0_2 = arith.constant 0 : index
    %c0_3 = arith.constant 0 : index
    %2 = vector.load %arg2[%c0_2, %c0_3] : memref<128x128xf32, #tpu.memory_space<vmem>>, vector<64x128xf32>
    %3 = vector.shape_cast %2 : vector<64x128xf32> to vector<1x64x128xf32>
    %4 = vector.broadcast %3 : vector<1x64x128xf32> to vector<8x64x128xf32>
    %5 = arith.mulf %1, %4 : vector<8x64x128xf32>
    %6 = arith.addf %0, %5 : vector<8x64x128xf32>
    %c0_4 = arith.constant 0 : index
    %c64 = arith.constant 64 : index
    %c0_5 = arith.constant 0 : index
    %7 = vector.load %arg1[%c0_4, %c64, %c0_5] : memref<8x128x128xf32, #tpu.memory_space<vmem>>, vector<8x64x128xf32>
    %c64_6 = arith.constant 64 : index
    %c0_7 = arith.constant 0 : index
    %8 = vector.load %arg2[%c64_6, %c0_7] : memref<128x128xf32, #tpu.memory_space<vmem>>, vector<64x128xf32>
    %9 = vector.shape_cast %8 : vector<64x128xf32> to vector<1x64x128xf32>
    %10 = vector.broadcast %9 : vector<1x64x128xf32> to vector<8x64x128xf32>
    %11 = arith.mulf %7, %10 : vector<8x64x128xf32>
    %12 = arith.addf %6, %11 : vector<8x64x128xf32>
    %cst_8 = arith.constant dense<0.000000e+00> : vector<8x128xf32>
    %13 = vector.multi_reduction <add>, %12, %cst_8 [1] : vector<8x64x128xf32> to vector<8x128xf32>
    %14 = vector.extract_strided_slice %13 {offsets = [0, 0], sizes = [8, 64], strides = [1, 1]} : vector<8x128xf32> to vector<8x64xf32>
    %15 = vector.extract_strided_slice %13 {offsets = [0, 64], sizes = [8, 64], strides = [1, 1]} : vector<8x128xf32> to vector<8x64xf32>
    %16 = arith.addf %14, %15 : vector<8x64xf32>
    %c0_9 = arith.constant 0 : index
    %17 = memref.load %arg6[%c0_9] : memref<2xf32, #tpu.memory_space<smem>>
    %18 = vector.broadcast %17 : f32 to vector<8x64xf32>
    %19 = arith.addf %16, %18 : vector<8x64xf32>
    %cst_10 = arith.constant 0.000000e+00 : f32
    %20 = vector.broadcast %cst_10 : f32 to vector<8x64xf32>
    %21 = arith.maximumf %19, %20 : vector<8x64xf32>
    %c0_11 = arith.constant 0 : index
    %c0_12 = arith.constant 0 : index
    %22 = vector.load %arg3[%c0_11, %c0_12] : memref<64x256xf32, #tpu.memory_space<vmem>>, vector<64x256xf32>
    %cst_13 = arith.constant dense<0.000000e+00> : vector<8x256xf32>
    %23 = tpu.matmul %21, %22, %cst_13 {dimension_numbers = #tpu.dot_dimension_numbers<[1], [0], [0], [1], [0, 0, 1, 1], [], []>} : vector<8x64xf32>, vector<64x256xf32>, vector<8x256xf32> -> vector<8x256xf32>
    %c0_14 = arith.constant 0 : index
    %c0_15 = arith.constant 0 : index
    %24 = vector.load %arg4[%c0_14, %c0_15] : memref<1x256xf32, #tpu.memory_space<vmem>>, vector<1x256xf32>
    %25 = vector.broadcast %24 : vector<1x256xf32> to vector<8x256xf32>
    %26 = arith.addf %23, %25 : vector<8x256xf32>
    %cst_16 = arith.constant 0.000000e+00 : f32
    %27 = vector.broadcast %cst_16 : f32 to vector<8x256xf32>
    %28 = arith.maximumf %26, %27 : vector<8x256xf32>
    %c0_17 = arith.constant 0 : index
    %c0_18 = arith.constant 0 : index
    %29 = vector.load %arg5[%c0_17, %c0_18] : memref<1x256xf32, #tpu.memory_space<vmem>>, vector<1x256xf32>
    %30 = vector.broadcast %29 : vector<1x256xf32> to vector<8x256xf32>
    %31 = arith.mulf %28, %30 : vector<8x256xf32>
    %cst_19 = arith.constant dense<0.000000e+00> : vector<8xf32>
    %32 = vector.multi_reduction <add>, %31, %cst_19 [1] : vector<8x256xf32> to vector<8xf32>
    %33 = vector.shape_cast %32 : vector<8xf32> to vector<8x1xf32>
    %c1 = arith.constant 1 : index
    %34 = memref.load %arg6[%c1] : memref<2xf32, #tpu.memory_space<smem>>
    %35 = vector.broadcast %34 : f32 to vector<8x1xf32>
    %36 = arith.addf %33, %35 : vector<8x1xf32>
    %37 = math.tanh %36 : vector<8x1xf32>
    %c0_20 = arith.constant 0 : index
    %c0_21 = arith.constant 0 : index
    %38 = vector.load %arg7[%c0_20, %c0_21] : memref<8x1xf32, #tpu.memory_space<vmem>>, vector<8x1xf32>
    tpu.vector_store %arg7[%c0_20, %c0_21], %37 {strides = array<i32>} : memref<8x1xf32, #tpu.memory_space<vmem>>, vector<8x1xf32>,
    return
  }
  func.func @transform_0(%arg0: i32) -> (i32, i32, i32) {
    %c0_i32 = arith.constant 0 : i32
    %c0_i32_0 = arith.constant 0 : i32
    %c0_i32_1 = arith.constant 0 : i32
    return %arg0, %c0_i32, %c0_i32_0 : i32, i32, i32
  }
  func.func @transform_1(%arg0: i32) -> (i32, i32) {
    %c0_i32 = arith.constant 0 : i32
    %c0_i32_0 = arith.constant 0 : i32
    %c0_i32_1 = arith.constant 0 : i32
    return %c0_i32, %c0_i32_0 : i32, i32
  }
  func.func @transform_2(%arg0: i32) -> (i32, i32) {
    %c0_i32 = arith.constant 0 : i32
    %c0_i32_0 = arith.constant 0 : i32
    %c0_i32_1 = arith.constant 0 : i32
    return %c0_i32, %c0_i32_0 : i32, i32
  }
  func.func @transform_3(%arg0: i32) -> (i32, i32) {
    %c0_i32 = arith.constant 0 : i32
    %c0_i32_0 = arith.constant 0 : i32
    %c0_i32_1 = arith.constant 0 : i32
    return %c0_i32, %c0_i32_0 : i32, i32
  }
  func.func @transform_4(%arg0: i32) -> (i32, i32) {
    %c0_i32 = arith.constant 0 : i32
    %c0_i32_0 = arith.constant 0 : i32
    %c0_i32_1 = arith.constant 0 : i32
    return %c0_i32, %c0_i32_0 : i32, i32
  }
  func.func @transform_5(%arg0: i32) -> i32 {
    %c0_i32 = arith.constant 0 : i32
    %c0_i32_0 = arith.constant 0 : i32
    return %c0_i32 : i32
  }
  func.func @transform_6(%arg0: i32) -> (i32, i32) {
    %c0_i32 = arith.constant 0 : i32
    %c0_i32_0 = arith.constant 0 : i32
    return %arg0, %c0_i32 : i32, i32
  }
}

</mosaic_0001>

<bundles_post_ra>
// kernel: tpu_custom_call.1
= control target key start
LH: loop header
LB: loop body
LE: loop exit
PB: predicated region body
PF: predicated region fallthrough
CT: control target
= control target key end

     0   :  { %11 = vsyncpa [#allocation3], 0  ;;  %s1892_s0 = inlined_call_operand.hbm [shape: f32[16,128,128], index: 0, kind: input, shape index: {}]   ;;  %s1893_s1 = inlined_call_operand.hbm [shape: f32[128,128], index: 1, kind: input, shape index: {}]   ;;  %s1894_s2 = inlined_call_operand.hbm [shape: f32[64,256], index: 2, kind: input, shape index: {}]   ;;  %s1895_s3 = inlined_call_operand.vmem [shape: f32[1,256], index: 3, kind: input, shape index: {}]   ;;  %s1896_s4 = inlined_call_operand.vmem [shape: f32[1,256], index: 4, kind: input, shape index: {}]   ;;  %s1897_s5 = inlined_call_operand.vmem [shape: f32[2], index: 5, kind: input, shape index: {}]   ;;  %s1898_s6 = inlined_call_operand.vmem [shape: f32[16,1], index: 6, kind: output, shape index: {}]  }
   0x1   :  { %13 = vsyncpa [#allocation3 + $0x1], 0 }
   0x2   :  { %14 = vsyncpa [#allocation6], 0 }
   0x3   :  { %15 = vsyncpa [#allocation4], 0  ;;  %s1413_s21 = smov 0   ;;  %s1415_s22 = smov 0  }
   0x4   :  { %s1417_s23 = smov 0   ;;  %s1419_s24 = smov 0  }
   0x5 LB: > { %s1432_s25 = sadd.s32 4294967295, %s1366_s24   ;;  %p41_p0 = scmp.ne.s32.totalorder %s1358_s22, %s1354_s21  ;;  %s1366_s24 = sphi %s1419_s24, %s1915_s24   ;;  %s1362_s23 = sphi %s1417_s23, %s1914_s23   ;;  %s1358_s22 = sphi %s1415_s22, %s1913_s22   ;;  %s1354_s21 = sphi %s1413_s21, %s1912_s21  }
   0x6   : > { %p1899_p1 = scmp.eq.s32.totalorder %s1432_s25, 0  ;;  %p1130_p2 = scmp.ge.s32.totalorder %s1366_s24, 1 }
   0x7   : > { %p183_p3 = scmp.lt.s32.totalorder %s1366_s24, 3  ;;  %s1368_s28 = smov [#allocation5]  }
   0x8   : > { %p1440_p4 = por %p1899_p1, %p41_p0  ;;  %s195_s29 = sshll.u32 %s1368_s28, 4  ;;  %s196_s29 = int_to_ptr.vmem [resolvable:$true] %s195_s29 }
   0x9   : > { %p1444_p5 = pnand %p1130_p2, %p183_p3  ;;  %s1369_s7 = smov [#allocation7]  }
   0xa   : > { %s1902_s26 = scalar_select %p1440_p4, 1, 0 }
   0xb   : > { %s1903_s27 = scalar_select %p1444_p5, 1, 0 }
   0xc   : > { %p1165_p6 = pneg %p1444_p5  ;;  %s208_s8 = sshll.u32 %s1369_s7, 4  ;;  %s209_s8 = int_to_ptr.vmem [resolvable:$true] %s208_s8 }
   0xd   : > { %s1240_s9 = scalar_lea.vmem %s196_s29, 2048  ;;  %p1248_p12 = scmp.lt.s32.totalorder %s196_s29, %s196_s29 }
   0xe   : > { %p1452_p7 = pnand %p1165_p6, %p1899_p1  ;;  %p1241_p9 = scmp.ne.s32.totalorder %s196_s29, %s1240_s9 }
   0xf   : > { %p1249_p13 = scmp.lt.s32.totalorder %s1240_s9, %s1240_s9 }
  0x10   : > { %p1231_p8 = pneg %p1452_p7 }
  0x11   : > { %p1250_p0 = por %p1249_p13, %p1248_p12 }
  0x12   : > { %p1243_p10 = pnand %p1241_p9, %p1231_p8 }
  0x14   : > { %p1244_p11 = pneg %p1243_p10 }
  0x16   : > { %p1251_p2 = pnand %p1250_p0, %p1244_p11 }
  0x18   : > { %1254 = shalt.err (!%p1251_p2)
}
  0x19   : > { %s1370_s10 = smov 128   ;;  %s1371_s11 = smov 8  }
  0x1a   : > { %1168 = dma.hbm_to_vmem [thread:$0]  (!%p1452_p7), %s1893_s1, 2048, %s196_s29, [#allocation6], %s1370_s10, %s1370_s10, %s1371_s11  }
  0x1b   : > { %s1266_s14 = scalar_lea.vmem %s209_s8, 2048  ;;  %p1274_p10 = scmp.lt.s32.totalorder %s209_s8, %s209_s8 }
  0x1c   : > { %p1267_p3 = scmp.ne.s32.totalorder %s209_s8, %s1266_s14  ;;  %p1275_p11 = scmp.lt.s32.totalorder %s1266_s14, %s1266_s14 }
  0x1e   : > { %p1269_p6 = pnand %p1267_p3, %p1231_p8  ;;  %p1276_p12 = por %p1275_p11, %p1274_p10 }
  0x20   : > { %p1270_p9 = pneg %p1269_p6 }
  0x22   : > { %p1277_p13 = pnand %p1276_p12, %p1270_p9 }
  0x24   : > { %1280 = shalt.err (!%p1277_p13)
}
  0x25   : > { %s1372_s15 = smov 256   ;;  %s1373_s16 = smov 16  }
  0x26   : > { %1171 = dma.hbm_to_vmem [thread:$0]  (!%p1452_p7), %s1894_s2, 2048, %s209_s8, [#allocation6], %s1372_s15, %s1372_s15, %s1373_s16  }
  0x27   : > { %s228_s21 = sshll.u32 %s1897_s5, 4  ;;  %s229_s21 = int_to_ptr.vmem [resolvable:$true] %s228_s21 }
  0x28   : > { %s1281_s28 = scalar_lea.vmem %s229_s21, 16  ;;  %p1289_p6 = scmp.lt.s32.totalorder %s229_s21, %s229_s21 }
  0x29   : > { %p1282_p0 = scmp.ne.s32.totalorder %s229_s21, %s1281_s28  ;;  %p1290_p9 = scmp.lt.s32.totalorder %s1281_s28, %s1281_s28 }
  0x2b   : > { %p1284_p2 = pnand %p1282_p0, %p1231_p8  ;;  %p1291_p10 = por %p1290_p9, %p1289_p6 }
  0x2d   : > { %p1285_p3 = pneg %p1284_p2 }
  0x2f   : > { %p1292_p11 = pnand %p1291_p10, %p1285_p3 }
  0x31   : > { %1295 = shalt.err (!%p1292_p11)
}
  0x32   : > { %s1374_s29 = smov [#allocation8]   ;;  %s1486_s7 = sadd.s32 1, %s1366_s24  }
  0x33   : > { %1174 = dma.vmem_to_smem (!%p1452_p7), %s229_s21, 16, %s1374_s29, [#allocation4]  }
  0x34   : > { %s25_s8 = ssub.s32 %s1366_s24, %s1486_s7  ;;  %s28_s9 = sadd.s32 1, %s1362_s23 }
  0x35   : > { %p26_p8 = scmp.eq.s32.totalorder %s25_s8, 0  ;;  %p35_p12 = scmp.ne.s32.totalorder %s1362_s23, %s1358_s22 }
  0x36   : > { %p36_p13 = scmp.eq.s32.totalorder %s1366_s24, 0  ;;  %p1182_p0 = scmp.lt.s32.totalorder %s1366_s24, 2 }
  0x37   : > { %s1496_s30 = scalar_select %p26_p8, %s1362_s23, %s28_s9  }
  0x38   : > { %p37_p2 = por %p36_p13, %p35_p12  ;;  %s239_s12 = sand.u32 1, %s1362_s23  }
  0x39   : > { %s1135_s13 = sshll.u32 %s239_s12, 10  ;;  %s1150_s14 = sshll.u32 %s1366_s24, 14 }
  0x3a   : > { %s1503_s17 = scalar_lea.hbm %s1892_s0, %s1150_s14  ;;  %s243_s18 = scalar_lea.vmem [#allocation2], %s1135_s13 }
  0x3b   : > { %s251_s19 = sshll.u32 %s243_s18, 4  ;;  %p1507_p7 = pnand %p1182_p0, %p37_p2  ;;  %s1505_s19 = int_to_ptr.vmem [resolvable:$true] %s251_s19 }
  0x3c   : > { %s1511_s21 = scalar_lea.sflag [#allocation3], %s239_s12  ;;  %s1296_s24 = scalar_lea.hbm %s1503_s17, 16384 }
  0x3d   : > { %p1297_p3 = scmp.ne.s32.totalorder %s1503_s17, %s1296_s24  ;;  %p1298_p6 = pneg %p1507_p7 }
  0x3e   : > { %s1301_s8 = scalar_lea.hbm %s1892_s0, 32768  ;;  %p1302_p11 = scmp.lt.s32.totalorder %s1503_s17, %s1892_s0 }
  0x3f   : > { %p1299_p9 = pnand %p1298_p6, %p1297_p3  ;;  %p1303_p8 = scmp.lt.s32.totalorder %s1301_s8, %s1296_s24 }
  0x41   : > { %p1300_p10 = pneg %p1299_p9  ;;  %p1304_p12 = por %p1303_p8, %p1302_p11 }
  0x43   : > { %p1305_p13 = pnand %p1304_p12, %p1300_p10 }
  0x45   : > { %1308 = shalt.err (!%p1305_p13)
}
  0x46   : > { %s1309_s12 = scalar_lea.vmem %s1505_s19, 16384  ;;  %s1375_s14 = smov [#allocation2]  }
  0x47   : > { %p1310_p0 = scmp.ne.s32.totalorder %s1505_s19, %s1309_s12  ;;  %s1314_s15 = sshll.u32 %s1375_s14, 4  ;;  %s1315_s15 = int_to_ptr.vmem [resolvable:$false] %s1314_s15 }
  0x48   : > { %s1316_s16 = scalar_lea.vmem %s1315_s15, 32768  ;;  %p1317_p9 = scmp.lt.s32.totalorder %s1505_s19, %s1315_s15 }
  0x49   : > { %p1312_p2 = pnand %p1310_p0, %p1298_p6  ;;  %p1318_p1 = scmp.lt.s32.totalorder %s1316_s16, %s1309_s12 }
  0x4b   : > { %p1313_p3 = pneg %p1312_p2  ;;  %p1319_p4 = por %p1318_p1, %p1317_p9 }
  0x4d   : > { %p1320_p5 = pnand %p1319_p4, %p1313_p3 }
  0x4f   : > { %1323 = shalt.err (!%p1320_p5)
}
  0x50   : > { %1178 = dma.hbm_to_vmem [thread:$0]  (!%p1507_p7), %s1503_s17, 16384, %s1505_s19, %s1511_s21, %s1370_s10, %s1370_s10, %s1371_s11  }
  0x51   : > { %p1906_p6 = scmp.ne.s32.totalorder %s1903_s27, 0 }
  0x52   : > { %s265_s18 = sand.u32 (!%p1906_p6), 1, %s1358_s22   ;;  %p1907_p1 = scmp.ne.s32.totalorder (!%p1906_p6), %s1902_s26, 0 }
  0x53   : > { %263 = sbr.rel (%p1906_p6) target bundleno = 679 (0x2a7), region = 44  ;;  %s1140_s24 = sshll.u32 (!%p1906_p6), %s265_s18, 10 }
  0x54   : > { %s266_s28 = scalar_lea.sflag (!%p1906_p6), [#allocation3], %s265_s18  ;;  %s1538_s29 = scalar_lea.vmem (!%p1906_p6), [#allocation2], %s1140_s24 }
  0x58   : > { %1341 = dma.done.wait (%p1907_p1), %s266_s28, 16384  }
  0x59   : > { %1343 = vsyncadd (%p1907_p1), %s266_s28, 4294950912  ;;  %p1908_p4 = scmp.eq.s32.totalorder %s1432_s25, 0 }
  0x5b   : > { %1345 = dma.done.wait (%p1908_p4), [#allocation6], 4096   ;;  %p1909_p5 = pmov %p1908_p4 }
  0x5c   : > { %p1910_p7 = pmov %p1908_p4 }
  0x5d   : > { %1347 = vsyncadd (%p1909_p5), [#allocation6], 4294963200 }
  0x5e   : > { %1349 = dma.done.wait (%p1910_p7), [#allocation4], 16   ;;  %p1911_p10 = pmov %p1908_p4 }
  0x60   : > { %1351 = vsyncadd (%p1911_p10), [#allocation4], 4294967280 }
  0x61   : > { %286 = sfence }
  0x62   : > { %v323_v0 = vld [vmem:[%s1538_s29 + $0x80] sm:$0xff]  ;;  %v324_v1 = vld [vmem:[%s1538_s29 + $0x88] sm:$0xff]  ;;  %v325_v2 = vld [vmem:[%s1538_s29 + $0x90] sm:$0xff]  ;;  %s1376_s26 = smov 64   ;;  %s859_s27 = sld [smem:[#allocation8]]  ;;  %vm914_vm0 = vcmask 1041409  }
  0x63   : > { %v326_v3 = vld [vmem:[%s1538_s29 + $0x98] sm:$0xff]  ;;  %v327_v4 = vld [vmem:[%s1538_s29 + $0xa0] sm:$0xff]  ;;  %v1559_v6 = vld [vmem:[#allocation5 + $0x8] sm:$0xff]  ;;  %vm917_vm1 = vcmask 1042434   ;;  %vm920_vm2 = vcmask 1043459   ;;  %vm923_vm3 = vcmask 1044484  }
  0x64   : > { %v1557_v5 = vld [vmem:[#allocation5] sm:$0xff]  ;;  %v328_v7 = vld [vmem:[%s1538_s29 + $0xa8] sm:$0xff]  ;;  %v1562_v8 = vld [vmem:[#allocation5 + $0x10] sm:$0xff]  ;;  %v396_v22 = vmul.f32 %v1559_v6, %v324_v1  ;;  %vm926_vm4 = vcmask 1045509   ;;  %vm929_vm5 = vcmask 1046534   ;;  %vm932_vm6 = vcmask 1047559  }
  0x65   : > { %v1564_v9 = vld [vmem:[#allocation5 + $0x18] sm:$0xff]  ;;  %v1566_v10 = vld [vmem:[#allocation5 + $0x20] sm:$0xff]  ;;  %v1568_v11 = vld [vmem:[#allocation5 + $0x28] sm:$0xff]  ;;  %v395_v21 = vmul.f32 %v1557_v5, %v323_v0  ;;  %v397_v26 = vmul.f32 %v1562_v8, %v325_v2  ;;  %vm934_vm7 = vcmask 523264   ;;  %s1146_s20 = sld [smem:[#allocation8 + $0x1]]  ;;  %p311_p11 = scmp.lt.s32.totalorder %s1432_s25, 1 }
  0x66   : > { %v523_v12 = vld [vmem:[%s1538_s29 + $0xc0] sm:$0xff]  ;;  %v524_v13 = vld [vmem:[%s1538_s29 + $0xc8] sm:$0xff]  ;;  %v329_v14 = vld [vmem:[%s1538_s29 + $0xb0] sm:$0xff]  ;;  %v398_v27 = vmul.f32 %v1564_v9, %v326_v3  ;;  %v399_v28 = vmul.f32 %v1566_v10, %v327_v4  ;;  %v400_v32 = vmul.f32 %v1568_v11, %v328_v7  ;;  %vm1031_vm8 = vcmask 7168  }
  0x67   : > { %v1573_v15 = vld [vmem:[#allocation5 + $0x30] sm:$0xff]  ;;  %v526_v17 = vld [vmem:[%s1538_s29 + $0xd8] sm:$0xff]  ;;  %v527_v18 = vld [vmem:[%s1538_s29 + $0xe0] sm:$0xff]  ;;  %s1917_s25 = smov (!%p311_p11, %s1432_s25), 1 }
  0x68   : > { %v525_v16 = vld [vmem:[%s1538_s29 + $0xd0] sm:$0xff]  ;;  %v330_v19 = vld [vmem:[%s1538_s29 + $0xb8] sm:$0xff]  ;;  %v528_v23 = vld [vmem:[%s1538_s29 + $0xe8] sm:$0xff]  ;;  %v401_v45 = vmul.f32 %v1573_v15, %v329_v14  ;;  %s1144_s21 = sshll.u32 %s1917_s25, 3 }
  0x69   : > { %v1579_v20 = vld [vmem:[#allocation5 + $0x38] sm:$0xff]  ;;  %v529_v24 = vld [vmem:[%s1538_s29 + $0xf0] sm:$0xff]  ;;  %v1589_v29 = vld [vmem:[#allocation5 + $0x40] sm:$0xff]  ;;  %s314_s13 = scalar_lea.vmem %s1898_s6, %s1144_s21 }
  0x6a   : > { %v530_v25 = vld [vmem:[%s1538_s29 + $0xf8] sm:$0xff]  ;;  %v1591_v30 = vld [vmem:[#allocation5 + $0x48] sm:$0xff]  ;;  %v1593_v31 = vld [vmem:[#allocation5 + $0x50] sm:$0xff]  ;;  %v595_v36 = vmul.f32 %v1589_v29, %v523_v12  ;;  %v402_v51 = vmul.f32 %v1579_v20, %v330_v19 }
  0x6b   : > { %v1596_v33 = vld [vmem:[#allocation5 + $0x58] sm:$0xff]  ;;  %v1598_v34 = vld [vmem:[#allocation5 + $0x60] sm:$0xff]  ;;  %v1600_v35 = vld [vmem:[#allocation5 + $0x68] sm:$0xff]  ;;  %v596_v37 = vmul.f32 %v1591_v30, %v524_v13  ;;  %v597_v38 = vmul.f32 %v1593_v31, %v525_v16 }
  0x6c   : > { %v1605_v39 = vld [vmem:[#allocation5 + $0x70] sm:$0xff]  ;;  %v1607_v40 = vld [vmem:[#allocation5 + $0x78] sm:$0xff]  ;;  %v598_v41 = vmul.f32 %v1596_v33, %v526_v17  ;;  %v599_v42 = vmul.f32 %v1598_v34, %v527_v18  ;;  %v600_v43 = vmul.f32 %v1600_v35, %v528_v23  ;;  %v315_v44 = vld [vmem:[%s1538_s29] sm:$0xff]  ;;  %v659_v46 = vadd.f32 %v595_v36, %v395_v21 }
  0x6d   : > { %v660_v47 = vadd.f32 %v596_v37, %v396_v22  ;;  %v316_v48 = vld [vmem:[%s1538_s29 + $0x8] sm:$0xff]  ;;  %v317_v49 = vld [vmem:[%s1538_s29 + $0x10] sm:$0xff]  ;;  %v318_v50 = vld [vmem:[%s1538_s29 + $0x18] sm:$0xff]  ;;  %v601_v52 = vmul.f32 %v1605_v39, %v529_v24  ;;  %v602_v53 = vmul.f32 %v1607_v40, %v530_v25  ;;  %v661_v54 = vadd.f32 %v597_v38, %v397_v26 }
  0x6e   : > { %v319_v55 = vld [vmem:[%s1538_s29 + $0x20] sm:$0xff]  ;;  %v320_v56 = vld [vmem:[%s1538_s29 + $0x28] sm:$0xff]  ;;  %v321_v57 = vld [vmem:[%s1538_s29 + $0x30] sm:$0xff]  ;;  %v662_v58 = vadd.f32 %v598_v41, %v398_v27  ;;  %v663_v59 = vadd.f32 %v599_v42, %v399_v28  ;;  %v664_v60 = vadd.f32 %v600_v43, %v400_v32  ;;  %v387_v0 = vmul.f32 %v1557_v5, %v315_v44 }
  0x6f   : > { %v728_v61 = vadd.f32 %v660_v47, %v659_v46  ;;  %v515_v62 = vld [vmem:[%s1538_s29 + $0x40] sm:$0xff]  ;;  %v516_v63 = vld [vmem:[%s1538_s29 + $0x48] sm:$0xff]  ;;  %v388_v1 = vmul.f32 %v1559_v6, %v316_v48  ;;  %v389_v2 = vmul.f32 %v1562_v8, %v317_v49  ;;  %v390_v3 = vmul.f32 %v1564_v9, %v318_v50  ;;  %v517_v4 = vld [vmem:[%s1538_s29 + $0x50] sm:$0xff] }
  0x70   : > { %v518_v7 = vld [vmem:[%s1538_s29 + $0x58] sm:$0xff]  ;;  %v519_v12 = vld [vmem:[%s1538_s29 + $0x60] sm:$0xff]  ;;  %v391_v14 = vmul.f32 %v1566_v10, %v319_v55  ;;  %v392_v16 = vmul.f32 %v1568_v11, %v320_v56  ;;  %v393_v17 = vmul.f32 %v1573_v15, %v321_v57  ;;  %v520_v18 = vld [vmem:[%s1538_s29 + $0x68] sm:$0xff]  ;;  %v587_v23 = vmul.f32 %v1589_v29, %v515_v62 }
  0x71   : > { %v729_v13 = vadd.f32 %v728_v61, %v661_v54  ;;  %v521_v19 = vld [vmem:[%s1538_s29 + $0x70] sm:$0xff]  ;;  %v322_v21 = vld [vmem:[%s1538_s29 + $0x38] sm:$0xff]  ;;  %v588_v24 = vmul.f32 %v1591_v30, %v516_v63  ;;  %v589_v25 = vmul.f32 %v1593_v31, %v517_v4  ;;  %v590_v26 = vmul.f32 %v1596_v33, %v518_v7  ;;  %v331_v43 = vld [vmem:[%s1538_s29 + $0x100] sm:$0xff] }
  0x72   : > { %v522_v22 = vld [vmem:[%s1538_s29 + $0x78] sm:$0xff]  ;;  %v591_v28 = vmul.f32 %v1598_v34, %v519_v12  ;;  %v592_v32 = vmul.f32 %v1600_v35, %v520_v18  ;;  %v593_v36 = vmul.f32 %v1605_v39, %v521_v19  ;;  %v665_v37 = vadd.f32 %v601_v52, %v401_v45  ;;  %v332_v44 = vld [vmem:[%s1538_s29 + $0x108] sm:$0xff]  ;;  %v333_v50 = vld [vmem:[%s1538_s29 + $0x110] sm:$0xff] }
  0x73   : > { %v730_v27 = vadd.f32 %v729_v13, %v662_v58  ;;  %v651_v38 = vadd.f32 %v587_v23, %v387_v0  ;;  %v652_v41 = vadd.f32 %v588_v24, %v388_v1  ;;  %v653_v42 = vadd.f32 %v589_v25, %v389_v2  ;;  %v334_v54 = vld [vmem:[%s1538_s29 + $0x118] sm:$0xff]  ;;  %v335_v45 = vld [vmem:[%s1538_s29 + $0x120] sm:$0xff]  ;;  %v336_v58 = vld [vmem:[%s1538_s29 + $0x128] sm:$0xff] }
  0x74   : > { %v666_v46 = vadd.f32 %v602_v53, %v402_v51  ;;  %v394_v48 = vmul.f32 %v1579_v20, %v322_v21  ;;  %v594_v49 = vmul.f32 %v1607_v40, %v522_v22  ;;  %v654_v52 = vadd.f32 %v590_v26, %v390_v3  ;;  %v531_v51 = vld [vmem:[%s1538_s29 + $0x140] sm:$0xff]  ;;  %v532_v53 = vld [vmem:[%s1538_s29 + $0x148] sm:$0xff]  ;;  %v533_v0 = vld [vmem:[%s1538_s29 + $0x150] sm:$0xff] }
  0x75   : > { %v731_v47 = vadd.f32 %v730_v27, %v663_v59  ;;  %v655_v55 = vadd.f32 %v591_v28, %v391_v14  ;;  %v656_v56 = vadd.f32 %v592_v32, %v392_v16  ;;  %v715_v57 = vadd.f32 %v652_v41, %v651_v38  ;;  %v534_v1 = vld [vmem:[%s1538_s29 + $0x158] sm:$0xff]  ;;  %v535_v2 = vld [vmem:[%s1538_s29 + $0x160] sm:$0xff]  ;;  %v337_v4 = vld [vmem:[%s1538_s29 + $0x130] sm:$0xff] }
  0x76   : > { %v657_v61 = vadd.f32 %v593_v36, %v393_v17  ;;  %v403_v62 = vmul.f32 %v1557_v5, %v331_v43  ;;  %v404_v63 = vmul.f32 %v1559_v6, %v332_v44  ;;  %v405_v7 = vmul.f32 %v1562_v8, %v333_v50  ;;  %v536_v14 = vld [vmem:[%s1538_s29 + $0x168] sm:$0xff]  ;;  %v338_v22 = vld [vmem:[%s1538_s29 + $0x138] sm:$0xff]  ;;  %v339_v43 = vld [vmem:[%s1538_s29 + $0x180] sm:$0xff] }
  0x77   : > { %v732_v59 = vadd.f32 %v731_v47, %v664_v60  ;;  %v716_v3 = vadd.f32 %v715_v57, %v653_v42  ;;  %v406_v12 = vmul.f32 %v1564_v9, %v334_v54  ;;  %v407_v13 = vmul.f32 %v1566_v10, %v335_v45  ;;  %v537_v60 = vld [vmem:[%s1538_s29 + $0x170] sm:$0xff]  ;;  %v538_v23 = vld [vmem:[%s1538_s29 + $0x178] sm:$0xff]  ;;  %v340_v54 = vld [vmem:[%s1538_s29 + $0x188] sm:$0xff] }
  0x78   : > { %v408_v17 = vmul.f32 %v1568_v11, %v336_v58  ;;  %v603_v18 = vmul.f32 %v1589_v29, %v531_v51  ;;  %v604_v19 = vmul.f32 %v1591_v30, %v532_v53  ;;  %v605_v24 = vmul.f32 %v1593_v31, %v533_v0  ;;  %v341_v45 = vld [vmem:[%s1538_s29 + $0x190] sm:$0xff]  ;;  %v342_v51 = vld [vmem:[%s1538_s29 + $0x198] sm:$0xff]  ;;  %v343_v53 = vld [vmem:[%s1538_s29 + $0x1a0] sm:$0xff] }
  0x79   : > { %v733_v16 = vadd.f32 %v732_v59, %v665_v37  ;;  %v717_v21 = vadd.f32 %v716_v3, %v654_v52  ;;  %v606_v25 = vmul.f32 %v1596_v33, %v534_v1  ;;  %v607_v26 = vmul.f32 %v1598_v34, %v535_v2  ;;  %v344_v59 = vld [vmem:[%s1538_s29 + $0x1a8] sm:$0xff]  ;;  %v539_v0 = vld [vmem:[%s1538_s29 + $0x1c0] sm:$0xff]  ;;  %v345_v3 = vld [vmem:[%s1538_s29 + $0x1b0] sm:$0xff] }
  0x7a   : > { %v409_v28 = vmul.f32 %v1573_v15, %v337_v4  ;;  %v608_v32 = vmul.f32 %v1600_v35, %v536_v14  ;;  %v609_v36 = vmul.f32 %v1605_v39, %v537_v60  ;;  %v667_v38 = vadd.f32 %v603_v18, %v403_v62  ;;  %v540_v1 = vld [vmem:[%s1538_s29 + $0x1c8] sm:$0xff]  ;;  %v543_v18 = vld [vmem:[%s1538_s29 + $0x1e0] sm:$0xff] }
  0x7b   : > { %v734_v27 = vadd.f32 %v733_v16, %v666_v46  ;;  %v718_v37 = vadd.f32 %v717_v21, %v655_v55  ;;  %v668_v41 = vadd.f32 %v604_v19, %v404_v63  ;;  %v669_v42 = vadd.f32 %v605_v24, %v405_v7  ;;  %v544_v19 = vld [vmem:[%s1538_s29 + $0x1e8] sm:$0xff] }
  0x7c   : > { %v658_v47 = vadd.f32 %v594_v49, %v394_v48  ;;  %v410_v50 = vmul.f32 %v1579_v20, %v338_v22  ;;  %v610_v46 = vmul.f32 %v1607_v40, %v538_v23  ;;  %v670_v57 = vadd.f32 %v606_v25, %v406_v12  ;;  %v541_v12 = vld [vmem:[%s1538_s29 + $0x1d0] sm:$0xff] }
  0x7d   : > { %v735_v44 = vrot.slane %v734_v27, 4  ;;  %v719_v52 = vadd.f32 %v718_v37, %v656_v56  ;;  %v671_v55 = vadd.f32 %v607_v26, %v407_v13  ;;  %v741_v58 = vadd.f32 %v668_v41, %v667_v38  ;;  %v542_v13 = vld [vmem:[%s1538_s29 + $0x1d8] sm:$0xff]  ;;  %v545_v22 = vld [vmem:[%s1538_s29 + $0x1f0] sm:$0xff] }
  0x7e   : > { %v672_v48 = vadd.f32 %v608_v32, %v408_v17  ;;  %v673_v49 = vadd.f32 %v609_v36, %v409_v28  ;;  %v411_v63 = vmul.f32 %v1557_v5, %v339_v43  ;;  %v412_v4 = vmul.f32 %v1559_v6, %v340_v54  ;;  %v346_v37 = vld [vmem:[%s1538_s29 + $0x1b8] sm:$0xff] }
  0x7f   : > { %v736_v62 = vadd.f32 %v735_v44, %v734_v27  ;;  %v720_v2 = vadd.f32 %v719_v52, %v657_v61  ;;  %v742_v56 = vadd.f32 %v741_v58, %v669_v42  ;;  %v413_v7 = vmul.f32 %v1562_v8, %v341_v45 }
  0x80   : > { %v414_v60 = vmul.f32 %v1564_v9, %v342_v51  ;;  %v415_v16 = vmul.f32 %v1566_v10, %v343_v53  ;;  %v416_v17 = vmul.f32 %v1568_v11, %v344_v59  ;;  %v611_v23 = vmul.f32 %v1589_v29, %v539_v0  ;;  %v347_v53 = vld [vmem:[%s1538_s29 + $0x200] sm:$0xff]  ;;  %v348_v59 = vld [vmem:[%s1538_s29 + $0x208] sm:$0xff] }
  0x81   : > { %v737_v14 = vrot.slane %v736_v62, 2  ;;  %v721_v21 = vadd.f32 %v720_v2, %v658_v47  ;;  %v743_v61 = vadd.f32 %v742_v56, %v670_v57  ;;  %v612_v24 = vmul.f32 %v1591_v30, %v540_v1  ;;  %v546_v57 = vld [vmem:[%s1538_s29 + $0x1f8] sm:$0xff]  ;;  %v349_v2 = vld [vmem:[%s1538_s29 + $0x210] sm:$0xff] }
  0x82   : > { %v417_v26 = vmul.f32 %v1573_v15, %v345_v3  ;;  %v613_v27 = vmul.f32 %v1593_v31, %v541_v12  ;;  %v614_v28 = vmul.f32 %v1596_v33, %v542_v13  ;;  %v615_v38 = vmul.f32 %v1598_v34, %v543_v18  ;;  %v350_v56 = vld [vmem:[%s1538_s29 + $0x218] sm:$0xff] }
  0x83   : > { %v738_v25 = vadd.f32 %v737_v14, %v736_v62  ;;  %v722_v32 = vrot.slane %v721_v21, 4  ;;  %v744_v36 = vadd.f32 %v743_v61, %v671_v55  ;;  %v616_v41 = vmul.f32 %v1600_v35, %v544_v19  ;;  %v549_v19 = vld [vmem:[%s1538_s29 + $0x250] sm:$0xff] }
  0x84   : > { %v617_v43 = vmul.f32 %v1605_v39, %v545_v22  ;;  %v675_v44 = vadd.f32 %v611_v23, %v411_v63  ;;  %v676_v47 = vadd.f32 %v612_v24, %v412_v4  ;;  %v674_v45 = vadd.f32 %v610_v46, %v410_v50  ;;  %v547_v50 = vld [vmem:[%s1538_s29 + $0x240] sm:$0xff] }
  0x85   : > { %v739_v42 = vrot.slane %v738_v25, 1  ;;  %v723_v54 = vadd.f32 %v722_v32, %v721_v21  ;;  %v745_v52 = vadd.f32 %v744_v36, %v672_v48  ;;  %v677_v58 = vadd.f32 %v613_v27, %v413_v7  ;;  %v351_v7 = vld [vmem:[%s1538_s29 + $0x220] sm:$0xff]  ;;  %v550_v21 = vld [vmem:[%s1538_s29 + $0x258] sm:$0xff]  ;;  %v552_v27 = vld [vmem:[%s1538_s29 + $0x268] sm:$0xff] }
  0x86   : > { %v418_v51 = vmul.f32 %v1579_v20, %v346_v37  ;;  %v678_v1 = vadd.f32 %v614_v28, %v414_v60  ;;  %v754_v63 = vadd.f32 %v676_v47, %v675_v44  ;;  %v618_v46 = vmul.f32 %v1607_v40, %v546_v57  ;;  %v352_v60 = vld [vmem:[%s1538_s29 + $0x228] sm:$0xff]  ;;  %v353_v44 = vld [vmem:[%s1538_s29 + $0x230] sm:$0xff] }
  0x87   : > { %v1710_v55 = vadd.f32 %v739_v42, %v738_v25  ;;  %v724_v62 = vrot.slane %v723_v54, 2  ;;  %v746_v0 = vadd.f32 %v745_v52, %v673_v49  ;;  %v679_v48 = vadd.f32 %v615_v38, %v415_v16  ;;  %v548_v49 = vld [vmem:[%s1538_s29 + $0x248] sm:$0xff] }
  0x88   : > { %v680_v3 = vadd.f32 %v616_v41, %v416_v17  ;;  %v681_v4 = vadd.f32 %v617_v43, %v417_v26  ;;  %v755_v14 = vadd.f32 %v754_v63, %v677_v58  ;;  %v419_v18 = vmul.f32 %v1557_v5, %v347_v53  ;;  %v551_v17 = vld [vmem:[%s1538_s29 + $0x260] sm:$0xff] }
  0x89   : > { %829 = vrot.lane.b32.xlu0 %v1710_v55, %s1376_s26  ;;  %v725_v12 = vadd.f32 %v724_v62, %v723_v54  ;;  %v747_v13 = vadd.f32 %v746_v0, %v674_v45  ;;  %v420_v61 = vmul.f32 %v1559_v6, %v348_v59  ;;  %v421_v22 = vmul.f32 %v1562_v8, %v349_v2  ;;  %v354_v54 = vld [vmem:[%s1538_s29 + $0x238] sm:$0xff]  ;;  %v553_v45 = vld [vmem:[%s1538_s29 + $0x270] sm:$0xff] }
  0x8a   : > { %v422_v16 = vmul.f32 %v1564_v9, %v350_v56  ;;  %v619_v23 = vmul.f32 %v1589_v29, %v547_v50  ;;  %v756_v26 = vadd.f32 %v755_v14, %v678_v1  ;;  %v620_v28 = vmul.f32 %v1591_v30, %v548_v49  ;;  %v554_v1 = vld [vmem:[%s1538_s29 + $0x278] sm:$0xff]  ;;  %v355_v50 = vld [vmem:[%s1538_s29 + $0x280] sm:$0xff]  ;;  %v357_v14 = vld [vmem:[%s1538_s29 + $0x290] sm:$0xff] }
  0x8b   : > { %v726_v24 = vrot.slane %v725_v12, 1  ;;  %v748_v25 = vrot.slane %v747_v13, 4  ;;  %v423_v32 = vmul.f32 %v1566_v10, %v351_v7  ;;  %v424_v36 = vmul.f32 %v1568_v11, %v352_v60 }
  0x8c   : > { %v621_v37 = vmul.f32 %v1593_v31, %v549_v19  ;;  %v622_v38 = vmul.f32 %v1596_v33, %v550_v21  ;;  %v757_v43 = vadd.f32 %v756_v26, %v679_v48  ;;  %v623_v47 = vmul.f32 %v1598_v34, %v551_v17  ;;  %v356_v48 = vld [vmem:[%s1538_s29 + $0x288] sm:$0xff]  ;;  %v557_v21 = vld [vmem:[%s1538_s29 + $0x2d0] sm:$0xff] }
  0x8d   : > { %v1738_v41 = vadd.f32 %v726_v24, %v725_v12  ;;  %v749_v42 = vadd.f32 %v748_v25, %v747_v13  ;;  %v624_v52 = vmul.f32 %v1600_v35, %v552_v27  ;;  %v683_v57 = vadd.f32 %v619_v23, %v419_v18  ;;  %v558_v24 = vld [vmem:[%s1538_s29 + $0x2d8] sm:$0xff]  ;;  %v559_v27 = vld [vmem:[%s1538_s29 + $0x2e0] sm:$0xff] }
  0x8e   : > { %v684_v58 = vadd.f32 %v620_v28, %v420_v61  ;;  %v685_v53 = vadd.f32 %v621_v37, %v421_v22  ;;  %v682_v62 = vadd.f32 %v618_v46, %v418_v51  ;;  %v758_v0 = vadd.f32 %v757_v43, %v680_v3  ;;  %v555_v51 = vld [vmem:[%s1538_s29 + $0x2c0] sm:$0xff]  ;;  %v556_v46 = vld [vmem:[%s1538_s29 + $0x2c8] sm:$0xff] }
  0x8f   : > { %827 = vrot.lane.b32.xlu1 %v1738_v41, %s1376_s26  ;;  %v750_v59 = vrot.slane %v749_v42, 2  ;;  %v425_v63 = vmul.f32 %v1573_v15, %v353_v44  ;;  %v686_v2 = vadd.f32 %v622_v38, %v422_v16  ;;  %v426_v12 = vmul.f32 %v1579_v20, %v354_v54  ;;  %v358_v16 = vld [vmem:[%s1538_s29 + $0x298] sm:$0xff]  ;;  %v360_v44 = vld [vmem:[%s1538_s29 + $0x2a8] sm:$0xff] }
  0x90   : > { %v767_v56 = vadd.f32 %v684_v58, %v683_v57  ;;  %v759_v49 = vadd.f32 %v758_v0, %v681_v4  ;;  %v625_v13 = vmul.f32 %v1605_v39, %v553_v45  ;;  %v626_v3 = vmul.f32 %v1607_v40, %v554_v1  ;;  %v359_v4 = vld [vmem:[%s1538_s29 + $0x2a0] sm:$0xff]  ;;  %v362_v54 = vld [vmem:[%s1538_s29 + $0x2b8] sm:$0xff] }
  0x91   : > { %v751_v7 = vadd.f32 %v750_v59, %v749_v42  ;;  %v687_v60 = vadd.f32 %v623_v47, %v423_v32  ;;  %v688_v18 = vadd.f32 %v624_v52, %v424_v36  ;;  %v427_v17 = vmul.f32 %v1557_v5, %v355_v50  ;;  %v361_v47 = vld [vmem:[%s1538_s29 + $0x2b0] sm:$0xff] }
  0x92   : > { %v768_v19 = vadd.f32 %v767_v56, %v685_v53  ;;  %v760_v22 = vadd.f32 %v759_v49, %v682_v62  ;;  %v428_v23 = vmul.f32 %v1559_v6, %v356_v48  ;;  %v429_v26 = vmul.f32 %v1562_v8, %v357_v14  ;;  %v560_v53 = vld [vmem:[%s1538_s29 + $0x2e8] sm:$0xff]  ;;  %v562_v56 = vld [vmem:[%s1538_s29 + $0x2f8] sm:$0xff]  ;;  %v363_v14 = vld [vmem:[%s1538_s29 + $0x300] sm:$0xff] }
  0x93   : > { %v752_v61 = vrot.slane %v751_v7, 1  ;;  %v627_v28 = vmul.f32 %v1589_v29, %v555_v51  ;;  %v628_v32 = vmul.f32 %v1591_v30, %v556_v46  ;;  %v689_v38 = vadd.f32 %v625_v13, %v425_v63  ;;  %v364_v51 = vld [vmem:[%s1538_s29 + $0x308] sm:$0xff] }
  0x94   : > { %v769_v25 = vadd.f32 %v768_v19, %v686_v2  ;;  %v761_v37 = vrot.slane %v760_v22, 4  ;;  %v629_v42 = vmul.f32 %v1593_v31, %v557_v21  ;;  %v430_v45 = vmul.f32 %v1564_v9, %v358_v16  ;;  %v561_v2 = vld [vmem:[%s1538_s29 + $0x2f0] sm:$0xff]  ;;  %v563_v19 = vld [vmem:[%s1538_s29 + $0x340] sm:$0xff]  ;;  %v564_v21 = vld [vmem:[%s1538_s29 + $0x348] sm:$0xff] }
  0x95   : > { %v1767_v36 = vadd.f32 %v752_v61, %v751_v7  ;;  %v431_v52 = vmul.f32 %v1566_v10, %v359_v4  ;;  %v630_v57 = vmul.f32 %v1596_v33, %v558_v24  ;;  %v631_v59 = vmul.f32 %v1598_v34, %v559_v27 }
  0x96   : > { %v770_v43 = vadd.f32 %v769_v25, %v687_v60  ;;  %v762_v58 = vadd.f32 %v761_v37, %v760_v22  ;;  %v691_v62 = vadd.f32 %v627_v28, %v427_v17  ;;  %v692_v0 = vadd.f32 %v628_v32, %v428_v23  ;;  %v366_v17 = vld [vmem:[%s1538_s29 + $0x318] sm:$0xff]  ;;  %v565_v23 = vld [vmem:[%s1538_s29 + $0x350] sm:$0xff] }
  0x97   : > { %831 = vrot.lane.b32.xlu0 %v1767_v36, %s1376_s26  ;;  %v690_v1 = vadd.f32 %v626_v3, %v426_v12  ;;  %v693_v50 = vadd.f32 %v629_v42, %v429_v26  ;;  %v432_v7 = vmul.f32 %v1568_v11, %v360_v44  ;;  %v433_v49 = vmul.f32 %v1573_v15, %v361_v47  ;;  %v566_v28 = vld [vmem:[%s1538_s29 + $0x358] sm:$0xff]  ;;  %v891_v37 = vld [vmem:[#allocation7 + $0x70] sm:$0xff] }
  0x98   : > { %v771_v63 = vadd.f32 %v770_v43, %v688_v18  ;;  %v763_v48 = vrot.slane %v762_v58, 2  ;;  %v434_v13 = vmul.f32 %v1579_v20, %v362_v54  ;;  %v632_v12 = vmul.f32 %v1600_v35, %v560_v53  ;;  %v365_v18 = vld [vmem:[%s1538_s29 + $0x310] sm:$0xff]  ;;  %v892_v32 = vld [vmem:[#allocation7 + $0x78] sm:$0xff] }
  0x99   : > { %v694_v3 = vadd.f32 %v630_v57, %v430_v45  ;;  %v780_v60 = vadd.f32 %v692_v0, %v691_v62  ;;  %v633_v22 = vmul.f32 %v1605_v39, %v561_v2  ;;  %v634_v16 = vmul.f32 %v1607_v40, %v562_v56  ;;  %953 = vmatprep.subr.mxu0 %v892_v32  ;;  %v567_v57 = vld [vmem:[%s1538_s29 + $0x360] sm:$0xff]  ;;  %v368_v62 = vld [vmem:[%s1538_s29 + $0x328] sm:$0xff]  ;;  %v369_v0 = vld [vmem:[%s1538_s29 + $0x330] sm:$0xff] }
  0x9a   : > { %v772_v46 = vadd.f32 %v771_v63, %v689_v38  ;;  %v764_v61 = vadd.f32 %v763_v48, %v762_v58  ;;  %v695_v4 = vadd.f32 %v631_v59, %v431_v52  ;;  %v435_v26 = vmul.f32 %v1557_v5, %v363_v14  ;;  %v367_v52 = vld [vmem:[%s1538_s29 + $0x320] sm:$0xff]  ;;  %954 = vmatpush1.msra.mxu0 %v891_v37  ;;  %v370_v48 = vld [vmem:[%s1538_s29 + $0x338] sm:$0xff]  ;;  %v572_v37 = vld [vmem:[%s1538_s29 + $0x3c8] sm:$0xff] }
  0x9b   : > { %v781_v25 = vadd.f32 %v780_v60, %v693_v50  ;;  %v436_v27 = vmul.f32 %v1559_v6, %v364_v51  ;;  %v437_v42 = vmul.f32 %v1562_v8, %v365_v18  ;;  %v635_v43 = vmul.f32 %v1589_v29, %v563_v19 }
  0x9c   : > { %v773_v24 = vadd.f32 %v772_v46, %v690_v1  ;;  %v765_v38 = vrot.slane %v764_v61, 1  ;;  %v636_v44 = vmul.f32 %v1591_v30, %v564_v21  ;;  %v696_v54 = vadd.f32 %v632_v12, %v432_v7  ;;  %v568_v7 = vld [vmem:[%s1538_s29 + $0x368] sm:$0xff]  ;;  %v570_v46 = vld [vmem:[%s1538_s29 + $0x378] sm:$0xff] }
  0x9d   : > { %v782_v45 = vadd.f32 %v781_v25, %v694_v3  ;;  %v637_v58 = vmul.f32 %v1593_v31, %v565_v23  ;;  %v697_v59 = vadd.f32 %v633_v22, %v433_v49  ;;  %v438_v1 = vmul.f32 %v1564_v9, %v366_v17  ;;  %v569_v49 = vld [vmem:[%s1538_s29 + $0x370] sm:$0xff]  ;;  %v372_v22 = vld [vmem:[%s1538_s29 + $0x388] sm:$0xff]  ;;  %v571_v25 = vld [vmem:[%s1538_s29 + $0x3c0] sm:$0xff] }
  0x9e   : > { %v774_v47 = vrot.slane %v773_v24, 4  ;;  %v1804_v53 = vadd.f32 %v765_v38, %v764_v61  ;;  %v638_v63 = vmul.f32 %v1596_v33, %v566_v28  ;;  %v698_v56 = vadd.f32 %v634_v16, %v434_v13  ;;  %v371_v61 = vld [vmem:[%s1538_s29 + $0x380] sm:$0xff]  ;;  %v573_v38 = vld [vmem:[%s1538_s29 + $0x3d0] sm:$0xff] }
  0x9f   : > { %v783_v50 = vadd.f32 %v782_v45, %v695_v4  ;;  %v699_v14 = vadd.f32 %v635_v43, %v435_v26  ;;  %v439_v51 = vmul.f32 %v1566_v10, %v367_v52  ;;  %v639_v12 = vmul.f32 %v1598_v34, %v567_v57  ;;  %v574_v45 = vld [vmem:[%s1538_s29 + $0x3d8] sm:$0xff]  ;;  %v890_v52 = vld [vmem:[#allocation7 + $0x68] sm:$0xff] }
  0xa0   : > { %v775_v2 = vadd.f32 %v774_v47, %v773_v24  ;;  %833 = vrot.lane.b32.xlu1 %v1804_v53, %s1376_s26  ;;  %v700_v3 = vadd.f32 %v636_v44, %v436_v27  ;;  %v701_v60 = vadd.f32 %v637_v58, %v437_v42  ;;  %v440_v19 = vmul.f32 %v1568_v11, %v368_v62  ;;  %v373_v24 = vld [vmem:[%s1538_s29 + $0x390] sm:$0xff]  ;;  %v374_v44 = vld [vmem:[%s1538_s29 + $0x398] sm:$0xff] }
  0xa1   : > { %v784_v18 = vadd.f32 %v783_v50, %v696_v54  ;;  %v441_v21 = vmul.f32 %v1573_v15, %v369_v0  ;;  %v442_v16 = vmul.f32 %v1579_v20, %v370_v48  ;;  %v640_v4 = vmul.f32 %v1600_v35, %v568_v7  ;;  %955 = vmatprep.subr.mxu0 %v890_v52  ;;  %v376_v7 = vld [vmem:[%s1538_s29 + $0x3a8] sm:$0xff] }
  0xa2   : > { %v776_v13 = vrot.slane %v775_v2, 2  ;;  %v702_v17 = vadd.f32 %v638_v63, %v438_v1  ;;  %v793_v23 = vadd.f32 %v700_v3, %v699_v14  ;;  %v641_v28 = vmul.f32 %v1605_v39, %v569_v49  ;;  %v576_v49 = vld [vmem:[%s1538_s29 + $0x3e8] sm:$0xff] }
  0xa3   : > { %v785_v27 = vadd.f32 %v784_v18, %v697_v59  ;;  %v642_v32 = vmul.f32 %v1607_v40, %v570_v46  ;;  %v703_v42 = vadd.f32 %v639_v12, %v439_v51  ;;  %v443_v47 = vmul.f32 %v1557_v5, %v371_v61  ;;  %v375_v59 = vld [vmem:[%s1538_s29 + $0x3a0] sm:$0xff]  ;;  %v577_v18 = vld [vmem:[%s1538_s29 + $0x3f0] sm:$0xff]  ;;  %v578_v61 = vld [vmem:[%s1538_s29 + $0x3f8] sm:$0xff] }
  0xa4   : > { %v777_v26 = vadd.f32 %v776_v13, %v775_v2  ;;  %v794_v43 = vadd.f32 %v793_v23, %v701_v60  ;;  %v444_v54 = vmul.f32 %v1559_v6, %v372_v22  ;;  %v445_v62 = vmul.f32 %v1562_v8, %v373_v24  ;;  %v575_v2 = vld [vmem:[%s1538_s29 + $0x3e0] sm:$0xff] }
  0xa5   : > { %v786_v58 = vadd.f32 %v785_v27, %v698_v56  ;;  %v643_v0 = vmul.f32 %v1589_v29, %v571_v25  ;;  %v704_v1 = vadd.f32 %v640_v4, %v440_v19  ;;  %v644_v5 = vmul.f32 %v1591_v30, %v572_v37  ;;  %v889_v24 = vld [vmem:[#allocation7 + $0x60] sm:$0xff]  ;;  %v888_v25 = vld [vmem:[#allocation7 + $0x58] sm:$0xff] }
  0xa6   : > { %v778_v57 = vrot.slane %v777_v26, 1  ;;  %v795_v63 = vadd.f32 %v794_v43, %v702_v17  ;;  %v645_v6 = vmul.f32 %v1593_v31, %v573_v38  ;;  %v446_v56 = vmul.f32 %v1564_v9, %v374_v44  ;;  %v377_v31 = vld [vmem:[%s1538_s29 + $0x3b0] sm:$0xff]  ;;  %956 = vmatpush1.msra.mxu0 %v889_v24 }
  0xa7   : > { %v787_v48 = vrot.slane %v786_v58, 4  ;;  %v646_v8 = vmul.f32 %v1596_v33, %v574_v45  ;;  %v705_v14 = vadd.f32 %v641_v28, %v441_v21  ;;  %v447_v51 = vmul.f32 %v1566_v10, %v375_v59  ;;  %v378_v21 = vld [vmem:[%s1538_s29 + $0x3b8] sm:$0xff]  ;;  %957 = vmatprep.subr.mxu0 %v888_v25 }
  0xa8   : > { %v1840_v50 = vadd.f32 %v778_v57, %v777_v26  ;;  %v796_v29 = vadd.f32 %v795_v63, %v703_v42  ;;  %v707_v46 = vadd.f32 %v643_v0, %v443_v47  ;;  %v647_v12 = vmul.f32 %v1598_v34, %v575_v2  ;;  %v887_v34 = vld [vmem:[#allocation7 + $0x50] sm:$0xff]  ;;  %v884_v0 = vld [vmem:[#allocation7 + $0x38] sm:$0xff] }
  0xa9   : > { %v788_v30 = vadd.f32 %v787_v48, %v786_v58  ;;  %v708_v3 = vadd.f32 %v644_v5, %v444_v54  ;;  %v709_v9 = vadd.f32 %v645_v6, %v445_v62  ;;  %v706_v60 = vadd.f32 %v642_v32, %v442_v16  ;;  %958 = vmatpush1.msra.mxu0 %v887_v34  ;;  %v886_v58 = vld [vmem:[#allocation7 + $0x48] sm:$0xff]  ;;  %v885_v62 = vld [vmem:[#allocation7 + $0x40] sm:$0xff]  ;;  %v883_v63 = vld [vmem:[#allocation7 + $0x30] sm:$0xff] }
  0xaa   : > { %835 = vrot.lane.b32.xlu0 %v1840_v50, %s1376_s26  ;;  %v797_v13 = vadd.f32 %v796_v29, %v704_v1  ;;  %v448_v33 = vmul.f32 %v1568_v11, %v376_v7  ;;  %v648_v10 = vmul.f32 %v1600_v35, %v576_v49  ;;  %v710_v22 = vadd.f32 %v646_v8, %v446_v56  ;;  %v882_v5 = vld [vmem:[#allocation7 + $0x28] sm:$0xff]  ;;  %v881_v48 = vld [vmem:[#allocation7 + $0x20] sm:$0xff]  ;;  %v880_v7 = vld [vmem:[#allocation7 + $0x18] sm:$0xff] }
  0xab   : > { %v789_v19 = vrot.slane %v788_v30, 2  ;;  %v806_v4 = vadd.f32 %v708_v3, %v707_v46  ;;  %v449_v23 = vmul.f32 %v1573_v15, %v377_v31  ;;  %v649_v16 = vmul.f32 %v1605_v39, %v577_v18  ;;  %959 = vmatprep.subr.mxu0 %v886_v58  ;;  %v879_v8 = vld [vmem:[#allocation7 + $0x10] sm:$0xff]  ;;  %v877_v29 = vld [vmem:[#allocation7] sm:$0xff] }
  0xac   : > { %v798_v17 = vadd.f32 %v797_v13, %v705_v14  ;;  %v711_v27 = vadd.f32 %v647_v12, %v447_v51  ;;  %v450_v32 = vmul.f32 %v1579_v20, %v378_v21  ;;  %v650_v35 = vmul.f32 %v1607_v40, %v578_v61  ;;  %960 = vmatpush1.msra.mxu0 %v885_v62  ;;  %v878_v14 = vld [vmem:[#allocation7 + $0x8] sm:$0xff] }
  0xad   : > { %v790_v26 = vadd.f32 %v789_v19, %v788_v30  ;;  %v807_v28 = vadd.f32 %v806_v4, %v709_v9  ;;  %v712_v38 = vadd.f32 %v648_v10, %v448_v33  ;;  %v713_v44 = vadd.f32 %v649_v16, %v449_v23  ;;  %961 = vmatprep.subr.mxu0 %v884_v0 }
  0xae   : > { %v799_v11 = vadd.f32 %v798_v17, %v706_v60  ;;  %v714_v39 = vadd.f32 %v650_v35, %v450_v32  ;;  %962 = vmatpush1.msra.mxu0 %v883_v63  ;;  %v1377_v49 = vmov 0.0   ;;  %v860_v13 = vstv %s859_s27  ;;  %v893_v63 = vld [vmem:[%s1895_s3] sm:$0x3] }
  0xaf   : > { %v791_v37 = vrot.slane %v790_v26, 1  ;;  %v808_v42 = vadd.f32 %v807_v28, %v710_v22  ;;  %963 = vmatprep.subr.mxu0 %v882_v5  ;;  %1001 = vmatprep.mubr.f32.mxu0 %v1377_v49 }
  0xb0   : > { %v800_v15 = vrot.slane %v799_v11, 4  ;;  %964 = vmatpush1.msra.mxu0 %v881_v48 }
  0xb1   : > { %v792_v43 = vadd.f32 %v791_v37, %v790_v26  ;;  %v809_v47 = vadd.f32 %v808_v42, %v711_v27  ;;  %965 = vmatprep.subr.mxu0 %v880_v7  ;;  %v1010_v7 = vld [vmem:[%s1896_s4] sm:$0x3] }
  0xb2   : > { %v801_v54 = vadd.f32 %v800_v15, %v799_v11  ;;  %966 = vmatpush1.msra.mxu0 %v879_v8 }
  0xb3   : > { %837 = vrot.lane.b32.xlu1 %v792_v43, %s1376_s26  ;;  %v810_v45 = vadd.f32 %v809_v47, %v712_v38  ;;  %967 = vmatprep.subr.mxu0 %v878_v14 }
  0xb4   : > { %v802_v52 = vrot.slane %v801_v54, 2  ;;  %968 = vmatpush1.msra.mxu0 %v877_v29 }
  0xb5   : > { %v811_v57 = vadd.f32 %v810_v45, %v713_v44 }
  0xb6   : > { %v803_v20 = vadd.f32 %v802_v52, %v801_v54 }
  0xb7   : > { %v812_v59 = vadd.f32 %v811_v57, %v714_v39 }
  0xb8   : > { %v804_v40 = vrot.slane %v803_v20, 1 }
  0xb9   : > { %v813_v1 = vrot.slane %v812_v59, 4 }
  0xba   : > { %v805_v2 = vadd.f32 %v804_v40, %v803_v20  ;;  %v895_v40 = vlaneseq }
  0xbb   : > { %v814_v6 = vadd.f32 %v813_v1, %v812_v59 }
  0xbc   : > { %839 = vrot.lane.b32.xlu0 %v805_v2, %s1376_s26  ;;  %v896_v0 = vshrl.u32 %v895_v40, 7 }
  0xbd   : > { %v815_v56 = vrot.slane %v814_v6, 2 }
  0xbe   : > { %v897_v1 = vsub.s32 0, %v896_v0 }
  0xbf   : > { %v816_v51 = vadd.f32 %v815_v56, %v814_v6 }
  0xc0   : > { %v898_v5 = vrot.slane %v893_v63, %v897_v1  ;;  %v1015_v29 = vrot.slane %v1010_v7, %v897_v1 }
  0xc1   : > { %v817_v46 = vrot.slane %v816_v51, 1 }
  0xc3   : > { %v818_v30 = vadd.f32 %v817_v46, %v816_v51 }
  0xc5   : > { %841 = vrot.lane.b32.xlu1 %v818_v30, %s1376_s26 }
  0xfb   : > { %v830_v31 = vpop.permute.xlu0 %829 }
  0xfc   : > { %v852_v60 = vadd.f32 %v830_v31, %v1710_v55 }
  0xfe   : > { %v862_v19 = vadd.f32 %v860_v13, %v852_v60 }
 0x100   : > { %v870_v17 = vmax.f32 %v862_v19, 0.0 }
 0x101   : > { %v828_v12 = vpop.permute.xlu1 %827 }
 0x102   : > { %v851_v21 = vadd.f32 %v828_v12, %v1738_v41  ;;  %v913_v27 = vrot.slane %v870_v17, 7 }
 0x104   : > { %v861_v23 = vadd.f32 %v860_v13, %v851_v21 }
 0x109   : > { %v832_v3 = vpop.permute.xlu0 %831 }
 0x10a   : > { %v853_v33 = vadd.f32 %v832_v3, %v1767_v36  ;;  %v869_v36 = vmax.f32 %v861_v23, 0.0  ;;  %v1028_v3 = vstv %s1146_s20 }
 0x10c   : > { %v863_v10 = vadd.f32 %v860_v13, %v853_v33  ;;  %v915_v37 = vsel %vm914_vm0, %v913_v27, %v869_v36 }
 0x10e   : > { %v871_v34 = vmax.f32 %v863_v10, 0.0 }
 0x110   : > { %v916_v41 = vrot.slane %v871_v34, 6 }
 0x112   : > { %v834_v9 = vpop.permute.xlu1 %833  ;;  %v918_v38 = vsel %vm917_vm1, %v916_v41, %v915_v37 }
 0x113   : > { %v854_v61 = vadd.f32 %v834_v9, %v1804_v53 }
 0x115   : > { %v864_v24 = vadd.f32 %v860_v13, %v854_v61 }
 0x117   : > { %v872_v28 = vmax.f32 %v864_v24, 0.0 }
 0x11c   : > { %v836_v18 = vpop.permute.xlu0 %835 }
 0x11d   : > { %v855_v22 = vadd.f32 %v836_v18, %v1840_v50  ;;  %v919_v50 = vrot.slane %v872_v28, 5 }
 0x11f   : > { %v865_v26 = vadd.f32 %v860_v13, %v855_v22  ;;  %v921_v44 = vsel %vm920_vm2, %v919_v50, %v918_v38 }
 0x121   : > { %v873_v32 = vmax.f32 %v865_v26, 0.0 }
 0x123   : > { %v922_v42 = vrot.slane %v873_v32, 4 }
 0x125   : > { %v838_v4 = vpop.permute.xlu1 %837  ;;  %v924_v39 = vsel %vm923_vm3, %v922_v42, %v921_v44 }
 0x126   : > { %v856_v25 = vadd.f32 %v838_v4, %v792_v43 }
 0x128   : > { %v866_v11 = vadd.f32 %v860_v13, %v856_v25 }
 0x12a   : > { %v874_v35 = vmax.f32 %v866_v11, 0.0 }
 0x12c   : > { %v925_v47 = vrot.slane %v874_v35, 3 }
 0x12e   : > { %v840_v55 = vpop.permute.xlu0 %839  ;;  %v927_v58 = vsel %vm926_vm4, %v925_v47, %v924_v39 }
 0x12f   : > { %v857_v16 = vadd.f32 %v840_v55, %v805_v2  ;;  %v901_v2 = vsub.s32 1, %v896_v0 }
 0x131   : > { %v867_v53 = vadd.f32 %v860_v13, %v857_v16  ;;  %v902_v6 = vrot.slane %v893_v63, %v901_v2  ;;  %v1019_v49 = vrot.slane %v1010_v7, %v901_v2 }
 0x133   : > { %v875_v15 = vmax.f32 %v867_v53, 0.0 }
 0x135   : > { %v928_v45 = vrot.slane %v875_v15, 2 }
 0x137   : > { %v842_v43 = vpop.permute.xlu1 %841  ;;  %v930_v20 = vsel %vm929_vm5, %v928_v45, %v927_v58 }
 0x138   : > { %v858_v54 = vadd.f32 %v842_v43, %v818_v30 }
 0x13a   : > { %v868_v52 = vadd.f32 %v860_v13, %v858_v54 }
 0x13c   : > { %v876_v57 = vmax.f32 %v868_v52, 0.0 }
 0x13e   : > { %v931_v59 = vrot.slane %v876_v57, 1 }
 0x140   : > { %v933_v62 = vsel %vm932_vm6, %v931_v59, %v930_v20 }
 0x141   : > { %1145 = vmatmul.mubr.msk.f32.vlgmr.msra.gmra.mxu0 %vm934_vm7, %v933_v62 }
 0x201   : > { %v1003_v48 = vpop.f32.mrf.mxu0 }
 0x202   : > { %v1004_v56 = vadd.f32 %v1003_v48, %v898_v5 }
 0x203   : > { %v1005_v8 = vpop.f32.mrf.mxu0 }
 0x204   : > { %v1008_v14 = vmax.f32 %v1004_v56, 0.0  ;;  %v1006_v51 = vadd.f32 %v1005_v8, %v902_v6 }
 0x206   : > { %v1009_v46 = vmax.f32 %v1006_v51, 0.0  ;;  %v1022_v30 = vmul.f32 %v1015_v29, %v1008_v14 }
 0x208   : > { %v1023_v31 = vmul.f32 %v1019_v49, %v1009_v46 }
 0x20a   : > { %v1024_v12 = vadd.f32 %v1023_v31, %v1022_v30 }
 0x20c   : > { %1025 = vadd.xlane.f32.xlu0 %v1024_v12 }
 0x295   : > { %v1026_v9 = vpop.xlane.xlu0 %1025 }
 0x296   : > { %v1029_v60 = vadd.f32 %v1028_v3, %v1026_v9 }
 0x298   : > { %1227 = vtanh.f32 %v1029_v60 }
 0x2a5   : > { %v1228_v13 = vpop.eup %1227 }
 0x2a6   : > { %1032 = vst.msk [vmem:[%s314_s13] sm:$0xff] %vm1031_vm8, %v1228_v13 }
 0x2a7 PF: > { %p18_p8 = scmp.ge.s32.totalorder %s1486_s7, 4   ;;  %s1912_s21 = smov %s1358_s22 }
 0x2a8   : > { %s1913_s22 = smov %s1362_s23  ;;  %s1914_s23 = smov %s1496_s30 }
 0x2a9   : > { %s1915_s24 = smov %s1486_s7  ;;  %20 = sbr.rel (!%p18_p8) target bundleno = 5 (0x5), region = 97 }
 0x2ae   :  { %1052 = vsyncpa [#allocation3], 1 }
 0x2af   :  { %1054 = vsyncpa [#allocation3 + $0x1], 1 }
 0x2b0   :  { %1055 = vsyncpa [#allocation6], 1 }
 0x2b1   :  { %1056 = vsyncpa [#allocation4], 1 }
 0x2b2   :  { %1058 = vsyncpa [#allocation4 + $0x1], 1 }

</bundles_post_ra>
